<compile_context>
chip_gen: v6e
topology: v6e:2x2x1
jax: 0.10.0
libtpu: 0.0.40
codegen_flags: <defaults>
</compile_context>

<pallas_src>
import jax
import jax.numpy as jnp
from jax.experimental import pallas as pl
from jax.experimental.pallas import tpu as pltpu


def _linear_kernel(x_ref, w_ref, b_ref, o_ref):
    # x_ref: (tm, K) bf16   w_ref: (K, Np) bf16   b_ref: (1, Np) f32   o_ref: (tm, Np)
    acc = jnp.dot(x_ref[...], w_ref[...], preferred_element_type=jnp.float32)
    # NOTE: if a K-reduction grid axis is ever added, this bias add must move behind
    # a pl.when(last-k) finalize so it is not accumulated K/tk times.
    o_ref[...] = (acc + b_ref[...]).astype(o_ref.dtype)


def _round_up(v, m):
    return ((v + m - 1) // m) * m


def prepare_public_classify_params(w, b):
    """One-time (init-time) parameter prep.

    w: (N, K) nn.Linear weight   b: (N,) bias
    returns (w_p, b_p, n_classes):
        w_p: (K, Np) bf16, transposed + zero-padded to a lane-dense Np (mult of 128)
        b_p: (1, Np) f32, zero-padded
    """
    N, K = w.shape
    Np = _round_up(max(N, 128), 128)
    w_p = jnp.zeros((K, Np), jnp.float32).at[:, :N].set(w.T.astype(jnp.float32))
    w_p = w_p.astype(jnp.bfloat16)
    b_p = jnp.zeros((1, Np), jnp.float32).at[0, :N].set(b.astype(jnp.float32))
    return w_p, b_p, N


def public_classify_forward(x, w_p, b_p, n_classes, *,
                            small_batch_max=256, max_tm=512,
                            out_dtype=jnp.float32, return_padded=False):
    """Linear head: y = x @ w_p + b_p, sliced back to (B, n_classes).

    x:   (B, K) float
    w_p: (K, Np) bf16  (pre-transposed, pre-padded weight from prepare_*_params)
    b_p: (1, Np) f32   (pre-padded bias)
    """
    B, K = x.shape
    K2, Np = w_p.shape
    assert K == K2 and b_p.shape == (1, Np)

    # Cast to bf16 FIRST (MXU-native input dtype, halves activation DMA traffic).
    x_bf = x.astype(jnp.bfloat16)

    # bf16 packs 16 rows per vreg -> 16-row sublane floor.
    Bp = _round_up(max(B, 16), 16)

    if Bp <= small_batch_max:
        # Small batch: single call, everything resident in VMEM, no grid.
        Bt = Bp
        x_p = x_bf if Bt == B else jnp.pad(x_bf, ((0, Bt - B), (0, 0)))
        cost = pl.CostEstimate(
            flops=2 * Bt * K * Np,
            transcendentals=0,
            bytes_accessed=Bt * K * 2 + K * Np * 2 + Np * 4
            + Bt * Np * jnp.dtype(out_dtype).itemsize,
        )
        out_p = pl.pallas_call(
            _linear_kernel,
            out_shape=jax.ShapeDtypeStruct((Bt, Np), out_dtype),
            in_specs=[
                pl.BlockSpec(memory_space=pltpu.MemorySpace.VMEM),
                pl.BlockSpec(memory_space=pltpu.MemorySpace.VMEM),
                pl.BlockSpec(memory_space=pltpu.MemorySpace.VMEM),
            ],
            out_specs=pl.BlockSpec(memory_space=pltpu.MemorySpace.VMEM),
            cost_estimate=cost,
        )(x_p, w_p, b_p)
    else:
        # Large batch: tile rows over the MXU height. Choose the tile so the batch
        # grid always has >= 2 steps (v7x shards a "parallel" axis across its 2 TCs
        # only when there are >= 2 iterations); cap tm at max_tm (~1 MiB bf16 x tile).
        num_tiles = max(2, pl.cdiv(Bp, max_tm))
        tm = _round_up(pl.cdiv(Bp, num_tiles), 16)
        Bt = tm * num_tiles
        x_p = x_bf if Bt == B else jnp.pad(x_bf, ((0, Bt - B), (0, 0)))
        cost = pl.CostEstimate(
            flops=2 * Bt * K * Np,
            transcendentals=0,
            bytes_accessed=Bt * K * 2 + K * Np * 2 + Np * 4
            + Bt * Np * jnp.dtype(out_dtype).itemsize,
        )
        out_p = pl.pallas_call(
            _linear_kernel,
            out_shape=jax.ShapeDtypeStruct((Bt, Np), out_dtype),
            grid=(num_tiles,),
            in_specs=[
                pl.BlockSpec((tm, K), lambda i: (i, 0)),
                pl.BlockSpec((K, Np), lambda i: (0, 0)),   # weight resident
                pl.BlockSpec((1, Np), lambda i: (0, 0)),   # bias resident
            ],
            out_specs=pl.BlockSpec((tm, Np), lambda i: (i, 0)),
            compiler_params=pltpu.CompilerParams(
                dimension_semantics=("parallel",)),
            cost_estimate=cost,
        )(x_p, w_p, b_p)

    if return_padded:
        # Consumer masks the padded columns / rows itself; no slice copy here.
        return out_p
    if Bt == B and Np == n_classes:
        return out_p
    return out_p[:B, :n_classes]


if __name__ == "__main__":
    # Small shapes consistent with the module's Linear(n_features, class_num).
    B = 8
    n_features = 1024
    class_num = 131

    key = jax.random.PRNGKey(0)
    kx, kw, kb = jax.random.split(key, 3)

    x = jax.random.normal(kx, (B, n_features), dtype=jnp.float32)
    # Deterministic parameter init (nn.Linear-style uniform bound).
    bound = 1.0 / (n_features ** 0.5)
    w = jax.random.uniform(kw, (class_num, n_features), dtype=jnp.float32,
                           minval=-bound, maxval=bound)
    b = jax.random.uniform(kb, (class_num,), dtype=jnp.float32,
                           minval=-bound, maxval=bound)

    # One-time parameter prep (hoisted out of the forward).
    w_p, b_p, n_out = prepare_public_classify_params(w, b)

    out = public_classify_forward(x, w_p, b_p, n_out)
    out = jax.block_until_ready(out)
    assert out.shape == (B, class_num)

    # References: exact f32 and bf16-operand (what the kernel actually computes).
    w_t = w.T
    ref_f32 = x @ w_t + b[None, :]
    x_bfr = x.astype(jnp.bfloat16).astype(jnp.float32)
    w_bfr = w_t.astype(jnp.bfloat16).astype(jnp.float32)
    ref_bf16 = x_bfr @ w_bfr + b[None, :]

    assert jnp.allclose(out, ref_bf16, atol=1e-2, rtol=1e-2), "mismatch vs bf16 reference"
    assert jnp.allclose(out, ref_f32, atol=1e-1, rtol=1e-1), "mismatch vs f32 reference"

    # Exercise the batch-tiled ("parallel" grid, >=2 steps) path as well.
    B_big = 512
    x_big = jax.random.normal(jax.random.PRNGKey(1), (B_big, n_features),
                              dtype=jnp.float32)
    out_big = jax.block_until_ready(
        public_classify_forward(x_big, w_p, b_p, n_out))
    ref_big = (x_big.astype(jnp.bfloat16).astype(jnp.float32) @ w_bfr) + b[None, :]
    assert out_big.shape == (B_big, class_num)
    assert jnp.allclose(out_big, ref_big, atol=1e-2, rtol=1e-2)

    # Exercise bf16-output (halved writeback) and return_padded fast path.
    out_bf = jax.block_until_ready(
        public_classify_forward(x_big, w_p, b_p, n_out,
                                out_dtype=jnp.bfloat16, return_padded=True))
    assert out_bf.shape[1] == w_p.shape[1] and out_bf.dtype == jnp.bfloat16
    assert jnp.allclose(out_bf[:B_big, :n_out].astype(jnp.float32), ref_big,
                        atol=5e-2, rtol=5e-2)

    print("KERNEL_OK")
</pallas_src>

<mosaic_0001>
module attributes {stable_mosaic.version = 11 : i64} {
  func.func @_linear_kernel(%arg0: memref<16x1024xbf16, #tpu.memory_space<vmem>>, %arg1: memref<1024x256xbf16, #tpu.memory_space<vmem>>, %arg2: memref<1x256xf32, #tpu.memory_space<vmem>>, %arg3: memref<16x256xf32, #tpu.memory_space<vmem>>) attributes {dimension_semantics = [], scalar_prefetch = 0 : i64, scratch_operands = 0 : i64, tpu.core_type = #tpu.core_type<tc>} {
    %c0 = arith.constant 0 : index
    %c0_0 = arith.constant 0 : index
    %0 = vector.load %arg0[%c0, %c0_0] : memref<16x1024xbf16, #tpu.memory_space<vmem>>, vector<16x1024xbf16>
    %c0_1 = arith.constant 0 : index
    %c0_2 = arith.constant 0 : index
    %1 = vector.load %arg1[%c0_1, %c0_2] : memref<1024x256xbf16, #tpu.memory_space<vmem>>, vector<1024x256xbf16>
    %cst = arith.constant dense<0.000000e+00> : vector<16x256xf32>
    %2 = tpu.matmul %0, %1, %cst {dimension_numbers = #tpu.dot_dimension_numbers<[1], [0], [0], [1], [0, 0, 1, 1], [], []>} : vector<16x1024xbf16>, vector<1024x256xbf16>, vector<16x256xf32> -> vector<16x256xf32>
    %c0_3 = arith.constant 0 : index
    %c0_4 = arith.constant 0 : index
    %3 = vector.load %arg2[%c0_3, %c0_4] : memref<1x256xf32, #tpu.memory_space<vmem>>, vector<1x256xf32>
    %4 = vector.broadcast %3 : vector<1x256xf32> to vector<16x256xf32>
    %5 = arith.addf %2, %4 : vector<16x256xf32>
    %c0_5 = arith.constant 0 : index
    %c0_6 = arith.constant 0 : index
    %6 = vector.load %arg3[%c0_5, %c0_6] : memref<16x256xf32, #tpu.memory_space<vmem>>, vector<16x256xf32>
    tpu.vector_store %arg3[%c0_5, %c0_6], %5 {strides = array<i32>} : memref<16x256xf32, #tpu.memory_space<vmem>>, vector<16x256xf32>,
    return
  }
}

</mosaic_0001>

<bundles_post_ra>
// kernel: tpu_custom_call.1
= control target key start
LH: loop header
LB: loop body
LE: loop exit
PB: predicated region body
PF: predicated region fallthrough
CT: control target
= control target key end

     0   :  { %8 = vsyncpa [#allocation3], 0  ;;  %s1525_s0 = inlined_call_operand.hbm [shape: bf16[16,1024], index: 0, kind: input, shape index: {}]   ;;  %s1526_s1 = inlined_call_operand.hbm [shape: bf16[1024,256], index: 1, kind: input, shape index: {}]   ;;  %s1527_s2 = inlined_call_operand.vmem [shape: f32[1,256], index: 2, kind: input, shape index: {}]   ;;  %s1528_s3 = inlined_call_operand.hbm [shape: f32[16,256], index: 3, kind: output, shape index: {}]  }
   0x1   :  { %9 = vsyncpa [#allocation6], 0 }
   0x2   :  { %10 = vsyncpa [#allocation4], 0  ;;  %s1468_s12 = smov [#allocation2]  }
   0x3   :  { %s16_s13 = sshll.u32 %s1468_s12, 4  ;;  %s17_s13 = int_to_ptr.vmem [resolvable:$true] %s16_s13 }
   0x4   :  { %s1410_s14 = scalar_lea.vmem %s17_s13, 1024  ;;  %p1415_p1 = scmp.lt.s32.totalorder %s17_s13, %s17_s13 }
   0x5   :  { %p1411_p0 = scmp.ne.s32.totalorder %s17_s13, %s1410_s14  ;;  %p1416_p2 = scmp.lt.s32.totalorder %s1410_s14, %s1410_s14 }
   0x7   :  { %p1417_p3 = por %p1416_p2, %p1415_p1 }
   0x9   :  { %p1418_p4 = pnand %p1417_p3, %p1411_p0 }
   0xb   :  { %1421 = shalt.err (!%p1418_p4)
}
   0xc   :  { %s1469_s15 = smov 512   ;;  %s1470_s16 = smov 32  }
   0xd   :  { %22 = dma.hbm_to_vmem [thread:$0]  %s1525_s0, 1024, %s17_s13, [#allocation3], %s1469_s15, %s1469_s15, %s1470_s16  }
   0xe   :  { %s1471_s19 = smov [#allocation5]  }
   0xf   :  { %s28_s20 = sshll.u32 %s1471_s19, 4  ;;  %s29_s20 = int_to_ptr.vmem [resolvable:$true] %s28_s20 }
  0x10   :  { %s1430_s21 = scalar_lea.vmem %s29_s20, 16384  ;;  %p1435_p6 = scmp.lt.s32.totalorder %s29_s20, %s29_s20 }
  0x11   :  { %p1431_p5 = scmp.ne.s32.totalorder %s29_s20, %s1430_s21  ;;  %p1436_p7 = scmp.lt.s32.totalorder %s1430_s21, %s1430_s21 }
  0x13   :  { %p1437_p8 = por %p1436_p7, %p1435_p6 }
  0x15   :  { %p1438_p9 = pnand %p1437_p8, %p1431_p5 }
  0x17   :  { %1441 = shalt.err (!%p1438_p9)
}
  0x18   :  { %s1472_s22 = smov 128   ;;  %s1473_s23 = smov 8  }
  0x19   :  { %34 = dma.hbm_to_vmem [thread:$0]  %s1526_s1, 16384, %s29_s20, [#allocation6], %s1472_s22, %s1472_s22, %s1473_s23  }
  0x1a   :  { %1462 = dma.done.wait [#allocation3], 1024  }
  0x1b   :  { %1463 = vsyncadd [#allocation3], 4294966272 }
  0x1c   :  { %1464 = dma.done.wait [#allocation6], 16384  }
  0x1d   :  { %1465 = vsyncadd [#allocation6], 4294950912  ;;  %v1210_v0 = vld [vmem:[#allocation5 + $0x74] ss:$8 sps:$4 sm:$0xff]   ;;  %v1214_v2 = vld [vmem:[#allocation5 + $0x70] ss:$8 sps:$4 sm:$0xff]  }
  0x1e   :  { %v1212_v1 = vld [vmem:[#allocation5 + $0x174] ss:$8 sps:$4 sm:$0xff]   ;;  %871 = vmatprep.subr.bf16.mxu0 %v1210_v0  ;;  %v1215_v3 = vld [vmem:[#allocation5 + $0x170] ss:$8 sps:$4 sm:$0xff]   ;;  %v1216_v4 = vld [vmem:[#allocation5 + $0x64] ss:$8 sps:$4 sm:$0xff]  }
  0x1f   :  { %914 = vmatprep.subr.bf16.mxu1 %v1212_v1  ;;  %872 = vmatpush1.bf16.msra.mxu0 %v1214_v2  ;;  %v1218_v5 = vld [vmem:[#allocation5 + $0x164] ss:$8 sps:$4 sm:$0xff]   ;;  %v1220_v6 = vld [vmem:[#allocation5 + $0x60] ss:$8 sps:$4 sm:$0xff]   ;;  %v1222_v8 = vld [vmem:[#allocation5 + $0x54] ss:$8 sps:$4 sm:$0xff]  }
  0x20   :  { %915 = vmatpush1.bf16.msra.mxu1 %v1215_v3  ;;  %873 = vmatprep.subr.bf16.mxu0 %v1216_v4  ;;  %v1221_v7 = vld [vmem:[#allocation5 + $0x160] ss:$8 sps:$4 sm:$0xff]   ;;  %v1224_v9 = vld [vmem:[#allocation5 + $0x154] ss:$8 sps:$4 sm:$0xff]   ;;  %v1226_v10 = vld [vmem:[#allocation5 + $0x50] ss:$8 sps:$4 sm:$0xff]  }
  0x21   :  { %916 = vmatprep.subr.bf16.mxu1 %v1218_v5  ;;  %v1227_v11 = vld [vmem:[#allocation5 + $0x150] ss:$8 sps:$4 sm:$0xff]   ;;  %v1228_v12 = vld [vmem:[#allocation5 + $0x44] ss:$8 sps:$4 sm:$0xff]   ;;  %v1232_v14 = vld [vmem:[#allocation5 + $0x40] ss:$8 sps:$4 sm:$0xff]  }
  0x22   :  { %v1230_v13 = vld [vmem:[#allocation5 + $0x144] ss:$8 sps:$4 sm:$0xff]   ;;  %v1233_v15 = vld [vmem:[#allocation5 + $0x140] ss:$8 sps:$4 sm:$0xff]   ;;  %v1234_v16 = vld [vmem:[#allocation5 + $0x34] ss:$8 sps:$4 sm:$0xff]  }
  0x23   :  { %874 = vmatpush1.bf16.msra.mxu0 %v1220_v6  ;;  %v1236_v17 = vld [vmem:[#allocation5 + $0x134] ss:$8 sps:$4 sm:$0xff]   ;;  %v1238_v18 = vld [vmem:[#allocation5 + $0x30] ss:$8 sps:$4 sm:$0xff]   ;;  %v1240_v20 = vld [vmem:[#allocation5 + $0x24] ss:$8 sps:$4 sm:$0xff]  }
  0x24   :  { %917 = vmatpush1.bf16.msra.mxu1 %v1221_v7  ;;  %875 = vmatprep.subr.bf16.mxu0 %v1222_v8  ;;  %v1239_v19 = vld [vmem:[#allocation5 + $0x130] ss:$8 sps:$4 sm:$0xff]   ;;  %v1242_v21 = vld [vmem:[#allocation5 + $0x124] ss:$8 sps:$4 sm:$0xff]   ;;  %v1244_v22 = vld [vmem:[#allocation5 + $0x20] ss:$8 sps:$4 sm:$0xff]  }
  0x25   :  { %918 = vmatprep.subr.bf16.mxu1 %v1224_v9  ;;  %v1245_v23 = vld [vmem:[#allocation5 + $0x120] ss:$8 sps:$4 sm:$0xff]   ;;  %v1246_v24 = vld [vmem:[#allocation5 + $0x14] ss:$8 sps:$4 sm:$0xff]   ;;  %v1250_v26 = vld [vmem:[#allocation5 + $0x10] ss:$8 sps:$4 sm:$0xff]  }
  0x26   :  { %v1248_v25 = vld [vmem:[#allocation5 + $0x114] ss:$8 sps:$4 sm:$0xff]   ;;  %v1251_v27 = vld [vmem:[#allocation5 + $0x110] ss:$8 sps:$4 sm:$0xff]   ;;  %v1252_v28 = vld [vmem:[#allocation5 + $0x4] ss:$8 sps:$4 sm:$0xff]  }
  0x27   :  { %876 = vmatpush1.bf16.msra.mxu0 %v1226_v10  ;;  %v1254_v29 = vld [vmem:[#allocation5 + $0x104] ss:$8 sps:$4 sm:$0xff]   ;;  %v1256_v30 = vld [vmem:[#allocation5] ss:$8 sps:$4 sm:$0xff]   ;;  %v1258_v32 = vld [vmem:[#allocation5 + $0xf4] ss:$8 sps:$4 sm:$0xff]  }
  0x28   :  { %919 = vmatpush1.bf16.msra.mxu1 %v1227_v11  ;;  %877 = vmatprep.subr.bf16.mxu0 %v1228_v12  ;;  %v1257_v31 = vld [vmem:[#allocation5 + $0x100] ss:$8 sps:$4 sm:$0xff]   ;;  %v1260_v33 = vld [vmem:[#allocation5 + $0x1f4] ss:$8 sps:$4 sm:$0xff]   ;;  %v1262_v34 = vld [vmem:[#allocation5 + $0xf0] ss:$8 sps:$4 sm:$0xff]  }
  0x29   :  { %920 = vmatprep.subr.bf16.mxu1 %v1230_v13  ;;  %v1263_v35 = vld [vmem:[#allocation5 + $0x1f0] ss:$8 sps:$4 sm:$0xff]   ;;  %v1264_v36 = vld [vmem:[#allocation5 + $0xe4] ss:$8 sps:$4 sm:$0xff]   ;;  %v1268_v38 = vld [vmem:[#allocation5 + $0xe0] ss:$8 sps:$4 sm:$0xff]  }
  0x2a   :  { %v1266_v37 = vld [vmem:[#allocation5 + $0x1e4] ss:$8 sps:$4 sm:$0xff]   ;;  %v1269_v39 = vld [vmem:[#allocation5 + $0x1e0] ss:$8 sps:$4 sm:$0xff]   ;;  %v1270_v40 = vld [vmem:[#allocation5 + $0xd4] ss:$8 sps:$4 sm:$0xff]  }
  0x2b   :  { %878 = vmatpush1.bf16.msra.mxu0 %v1232_v14  ;;  %v1272_v41 = vld [vmem:[#allocation5 + $0x1d4] ss:$8 sps:$4 sm:$0xff]   ;;  %v1274_v42 = vld [vmem:[#allocation5 + $0xd0] ss:$8 sps:$4 sm:$0xff]   ;;  %v1276_v44 = vld [vmem:[#allocation5 + $0xc4] ss:$8 sps:$4 sm:$0xff]  }
  0x2c   :  { %921 = vmatpush1.bf16.msra.mxu1 %v1233_v15  ;;  %879 = vmatprep.subr.bf16.mxu0 %v1234_v16  ;;  %v1275_v43 = vld [vmem:[#allocation5 + $0x1d0] ss:$8 sps:$4 sm:$0xff]   ;;  %v1278_v45 = vld [vmem:[#allocation5 + $0x1c4] ss:$8 sps:$4 sm:$0xff]   ;;  %v1280_v46 = vld [vmem:[#allocation5 + $0xc0] ss:$8 sps:$4 sm:$0xff]  }
  0x2d   :  { %922 = vmatprep.subr.bf16.mxu1 %v1236_v17  ;;  %v1281_v47 = vld [vmem:[#allocation5 + $0x1c0] ss:$8 sps:$4 sm:$0xff]   ;;  %v1282_v52 = vld [vmem:[#allocation5 + $0xb4] ss:$8 sps:$4 sm:$0xff]   ;;  %v1286_v56 = vld [vmem:[#allocation5 + $0xb0] ss:$8 sps:$4 sm:$0xff]  }
  0x2e   :  { %v43_v48 = vld [vmem:[#allocation2] sm:$0xff]  ;;  %v44_v50 = vld [vmem:[#allocation2 + $0x8] sm:$0xff]  ;;  %v1284_v54 = vld [vmem:[#allocation5 + $0x1b4] ss:$8 sps:$4 sm:$0xff]  }
  0x2f   :  { %880 = vmatpush1.bf16.msra.mxu0 %v1238_v18  ;;  %v47_v49 = vld [vmem:[#allocation2 + $0x20] sm:$0xff]  ;;  %v48_v51 = vld [vmem:[#allocation2 + $0x28] sm:$0xff]  ;;  %v1287_v57 = vld [vmem:[#allocation5 + $0x1b0] ss:$8 sps:$4 sm:$0xff]  }
  0x30   :  { %923 = vmatpush1.bf16.msra.mxu1 %v1239_v19  ;;  %881 = vmatprep.subr.bf16.mxu0 %v1240_v20  ;;  %v1066_v53 = vcombine.high %v43_v48, %v47_v49  ;;  %v1068_v55 = vcombine.high %v44_v50, %v48_v51  ;;  %v1288_v58 = vld [vmem:[#allocation5 + $0xa4] ss:$8 sps:$4 sm:$0xff]   ;;  %v1292_v60 = vld [vmem:[#allocation5 + $0xa0] ss:$8 sps:$4 sm:$0xff]   ;;  %v1294_v62 = vld [vmem:[#allocation5 + $0x94] ss:$8 sps:$4 sm:$0xff]   ;;  %v1065_v8 = vcombine.low %v43_v48, %v47_v49 }
  0x31   :  { %924 = vmatprep.subr.bf16.mxu1 %v1242_v21  ;;  %v1290_v59 = vld [vmem:[#allocation5 + $0x1a4] ss:$8 sps:$4 sm:$0xff]   ;;  %v1293_v61 = vld [vmem:[#allocation5 + $0x1a0] ss:$8 sps:$4 sm:$0xff]   ;;  %v1296_v63 = vld [vmem:[#allocation5 + $0x194] ss:$8 sps:$4 sm:$0xff]   ;;  %v1067_v9 = vcombine.low %v44_v50, %v48_v51 }
  0x32   :  { %903 = vmatprep.mubr.bf16.mxu0 %v1066_v53  ;;  %946 = vmatprep.mubr.bf16.mxu1 %v1068_v55  ;;  %v1298_v0 = vld [vmem:[#allocation5 + $0x90] ss:$8 sps:$4 sm:$0xff]   ;;  %v1300_v2 = vld [vmem:[#allocation5 + $0x84] ss:$8 sps:$4 sm:$0xff]   ;;  %v1304_v4 = vld [vmem:[#allocation5 + $0x80] ss:$8 sps:$4 sm:$0xff]  }
  0x33   :  { %882 = vmatpush1.bf16.msra.mxu0 %v1244_v22  ;;  %v1299_v1 = vld [vmem:[#allocation5 + $0x190] ss:$8 sps:$4 sm:$0xff]   ;;  %v1302_v3 = vld [vmem:[#allocation5 + $0x184] ss:$8 sps:$4 sm:$0xff]   ;;  %v1305_v5 = vld [vmem:[#allocation5 + $0x180] ss:$8 sps:$4 sm:$0xff]  }
  0x34   :  { %925 = vmatpush1.bf16.msra.mxu1 %v1245_v23  ;;  %883 = vmatprep.subr.bf16.mxu0 %v1246_v24  ;;  %v1308_v6 = vld [vmem:[#allocation5 + $0x274] ss:$8 sps:$4 sm:$0xff]   ;;  %v1306_v10 = vld [vmem:[#allocation5 + $0x270] ss:$8 sps:$4 sm:$0xff]   ;;  %v1314_v12 = vld [vmem:[#allocation5 + $0x264] ss:$8 sps:$4 sm:$0xff]  }
  0x35   :  { %926 = vmatprep.subr.bf16.mxu1 %v1248_v25  ;;  %v1311_v7 = vld [vmem:[#allocation5 + $0x374] ss:$8 sps:$4 sm:$0xff]   ;;  %v1309_v11 = vld [vmem:[#allocation5 + $0x370] ss:$8 sps:$4 sm:$0xff]   ;;  %v1317_v13 = vld [vmem:[#allocation5 + $0x364] ss:$8 sps:$4 sm:$0xff]  }
  0x36   :  { %v1312_v14 = vld [vmem:[#allocation5 + $0x260] ss:$8 sps:$4 sm:$0xff]   ;;  %v1320_v16 = vld [vmem:[#allocation5 + $0x254] ss:$8 sps:$4 sm:$0xff]   ;;  %v1318_v18 = vld [vmem:[#allocation5 + $0x250] ss:$8 sps:$4 sm:$0xff]  }
  0x37   :  { %884 = vmatpush1.bf16.msra.mxu0 %v1250_v26  ;;  %v1315_v15 = vld [vmem:[#allocation5 + $0x360] ss:$8 sps:$4 sm:$0xff]   ;;  %v1323_v17 = vld [vmem:[#allocation5 + $0x354] ss:$8 sps:$4 sm:$0xff]   ;;  %v1321_v19 = vld [vmem:[#allocation5 + $0x350] ss:$8 sps:$4 sm:$0xff]  }
  0x38   :  { %927 = vmatpush1.bf16.msra.mxu1 %v1251_v27  ;;  %885 = vmatprep.subr.bf16.mxu0 %v1252_v28  ;;  %v1326_v20 = vld [vmem:[#allocation5 + $0x244] ss:$8 sps:$4 sm:$0xff]   ;;  %v1324_v22 = vld [vmem:[#allocation5 + $0x240] ss:$8 sps:$4 sm:$0xff]   ;;  %v1332_v24 = vld [vmem:[#allocation5 + $0x234] ss:$8 sps:$4 sm:$0xff]  }
  0x39   :  { %928 = vmatprep.subr.bf16.mxu1 %v1254_v29  ;;  %v1329_v21 = vld [vmem:[#allocation5 + $0x344] ss:$8 sps:$4 sm:$0xff]   ;;  %v1327_v23 = vld [vmem:[#allocation5 + $0x340] ss:$8 sps:$4 sm:$0xff]   ;;  %v1335_v25 = vld [vmem:[#allocation5 + $0x334] ss:$8 sps:$4 sm:$0xff]  }
  0x3a   :  { %v1330_v26 = vld [vmem:[#allocation5 + $0x230] ss:$8 sps:$4 sm:$0xff]   ;;  %v1338_v28 = vld [vmem:[#allocation5 + $0x224] ss:$8 sps:$4 sm:$0xff]   ;;  %v1363_v53 = vld [vmem:[#allocation5 + $0x3e0] ss:$8 sps:$4 sm:$0xff]  }
  0x3b   :  { %886 = vmatpush1.bf16.msra.mxu0 %v1256_v30  ;;  %v1333_v27 = vld [vmem:[#allocation5 + $0x330] ss:$8 sps:$4 sm:$0xff]   ;;  %v1341_v29 = vld [vmem:[#allocation5 + $0x324] ss:$8 sps:$4 sm:$0xff]   ;;  %v1336_v30 = vld [vmem:[#allocation5 + $0x220] ss:$8 sps:$4 sm:$0xff]  }
  0x3c   :  { %929 = vmatpush1.bf16.msra.mxu1 %v1257_v31  ;;  %887 = vmatprep.subr.bf16.mxu0 %v1258_v32  ;;  %v1339_v31 = vld [vmem:[#allocation5 + $0x320] ss:$8 sps:$4 sm:$0xff]   ;;  %v1344_v32 = vld [vmem:[#allocation5 + $0x214] ss:$8 sps:$4 sm:$0xff]   ;;  %v1354_v48 = vld [vmem:[#allocation5 + $0x2f0] ss:$8 sps:$4 sm:$0xff]  }
  0x3d   :  { %930 = vmatprep.subr.bf16.mxu1 %v1260_v33  ;;  %v1347_v33 = vld [vmem:[#allocation5 + $0x314] ss:$8 sps:$4 sm:$0xff]   ;;  %v1357_v49 = vld [vmem:[#allocation5 + $0x3f0] ss:$8 sps:$4 sm:$0xff]   ;;  %v1362_v50 = vld [vmem:[#allocation5 + $0x2e4] ss:$8 sps:$4 sm:$0xff]  }
  0x3e   :  { %v1365_v51 = vld [vmem:[#allocation5 + $0x3e4] ss:$8 sps:$4 sm:$0xff]   ;;  %v1371_v55 = vld [vmem:[#allocation5 + $0x3d4] ss:$8 sps:$4 sm:$0xff]  }
  0x3f   :  { %888 = vmatpush2.bf16.msra.mxu0 %v1262_v34  ;;  %v1503_v34 = vld [vmem:[#allocation2 + $0x10] sm:$0xff] }
  0x40   :  { %931 = vmatpush2.bf16.msra.mxu1 %v1263_v35  ;;  %889 = vmatprep.subr.bf16.mxu0 %v1264_v36  ;;  %v1505_v35 = vld [vmem:[#allocation2 + $0x30] sm:$0xff]  ;;  %v1507_v36 = vld [vmem:[#allocation2 + $0x18] sm:$0xff] }
  0x41   :  { %932 = vmatprep.subr.bf16.mxu1 %v1266_v37  ;;  %v1509_v37 = vld [vmem:[#allocation2 + $0x38] sm:$0xff] }
  0x43   :  { %890 = vmatpush2.bf16.msra.mxu0 %v1268_v38  ;;  %v1342_v38 = vld [vmem:[#allocation5 + $0x210] ss:$8 sps:$4 sm:$0xff]  }
  0x44   :  { %933 = vmatpush2.bf16.msra.mxu1 %v1269_v39  ;;  %891 = vmatprep.subr.bf16.mxu0 %v1270_v40  ;;  %v1345_v39 = vld [vmem:[#allocation5 + $0x310] ss:$8 sps:$4 sm:$0xff]   ;;  %v1070_v40 = vcombine.high %v1503_v34, %v1505_v35 }
  0x45   :  { %934 = vmatprep.subr.bf16.mxu1 %v1272_v41  ;;  %v1350_v41 = vld [vmem:[#allocation5 + $0x204] ss:$8 sps:$4 sm:$0xff]  }
  0x47   :  { %892 = vmatpush2.bf16.msra.mxu0 %v1274_v42  ;;  %v1353_v42 = vld [vmem:[#allocation5 + $0x304] ss:$8 sps:$4 sm:$0xff]  }
  0x48   :  { %935 = vmatpush2.bf16.msra.mxu1 %v1275_v43  ;;  %893 = vmatprep.subr.bf16.mxu0 %v1276_v44  ;;  %v1072_v43 = vcombine.high %v1507_v36, %v1509_v37  ;;  %v1348_v44 = vld [vmem:[#allocation5 + $0x200] ss:$8 sps:$4 sm:$0xff]  }
  0x49   :  { %936 = vmatprep.subr.bf16.mxu1 %v1278_v45  ;;  %v1351_v45 = vld [vmem:[#allocation5 + $0x300] ss:$8 sps:$4 sm:$0xff]  }
  0x4b   :  { %894 = vmatpush2.bf16.msra.mxu0 %v1280_v46  ;;  %v1356_v46 = vld [vmem:[#allocation5 + $0x2f4] ss:$8 sps:$4 sm:$0xff]  }
  0x4c   :  { %937 = vmatpush2.bf16.msra.mxu1 %v1281_v47  ;;  %895 = vmatprep.subr.bf16.mxu0 %v1282_v52  ;;  %v1359_v47 = vld [vmem:[#allocation5 + $0x3f4] ss:$8 sps:$4 sm:$0xff]   ;;  %v1360_v52 = vld [vmem:[#allocation5 + $0x2e0] ss:$8 sps:$4 sm:$0xff]  }
  0x4d   :  { %938 = vmatprep.subr.bf16.mxu1 %v1284_v54  ;;  %v1368_v54 = vld [vmem:[#allocation5 + $0x2d4] ss:$8 sps:$4 sm:$0xff]  }
  0x4f   :  { %896 = vmatpush2.bf16.msra.mxu0 %v1286_v56  ;;  %v1366_v56 = vld [vmem:[#allocation5 + $0x2d0] ss:$8 sps:$4 sm:$0xff]  }
  0x50   :  { %939 = vmatpush2.bf16.msra.mxu1 %v1287_v57  ;;  %897 = vmatprep.subr.bf16.mxu0 %v1288_v58  ;;  %v1369_v57 = vld [vmem:[#allocation5 + $0x3d0] ss:$8 sps:$4 sm:$0xff]   ;;  %v1374_v58 = vld [vmem:[#allocation5 + $0x2c4] ss:$8 sps:$4 sm:$0xff]  }
  0x51   :  { %940 = vmatprep.subr.bf16.mxu1 %v1290_v59  ;;  %v1377_v59 = vld [vmem:[#allocation5 + $0x3c4] ss:$8 sps:$4 sm:$0xff]  }
  0x53   :  { %898 = vmatpush2.bf16.msra.mxu0 %v1292_v60  ;;  %v1372_v60 = vld [vmem:[#allocation5 + $0x2c0] ss:$8 sps:$4 sm:$0xff]  }
  0x54   :  { %941 = vmatpush2.bf16.msra.mxu1 %v1293_v61  ;;  %899 = vmatprep.subr.bf16.mxu0 %v1294_v62  ;;  %v1375_v61 = vld [vmem:[#allocation5 + $0x3c0] ss:$8 sps:$4 sm:$0xff]   ;;  %v1380_v62 = vld [vmem:[#allocation5 + $0x2b4] ss:$8 sps:$4 sm:$0xff]  }
  0x55   :  { %942 = vmatprep.subr.bf16.mxu1 %v1296_v63  ;;  %v1383_v63 = vld [vmem:[#allocation5 + $0x3b4] ss:$8 sps:$4 sm:$0xff]  }
  0x57   :  { %900 = vmatpush2.bf16.msra.mxu0 %v1298_v0  ;;  %v1378_v0 = vld [vmem:[#allocation5 + $0x2b0] ss:$8 sps:$4 sm:$0xff]  }
  0x58   :  { %943 = vmatpush2.bf16.msra.mxu1 %v1299_v1  ;;  %901 = vmatprep.subr.bf16.mxu0 %v1300_v2  ;;  %v1381_v1 = vld [vmem:[#allocation5 + $0x3b0] ss:$8 sps:$4 sm:$0xff]   ;;  %v1386_v2 = vld [vmem:[#allocation5 + $0x2a4] ss:$8 sps:$4 sm:$0xff]  }
  0x59   :  { %944 = vmatprep.subr.bf16.mxu1 %v1302_v3  ;;  %v1389_v3 = vld [vmem:[#allocation5 + $0x3a4] ss:$8 sps:$4 sm:$0xff]  }
  0x5b   :  { %902 = vmatpush2.bf16.msra.mxu0 %v1304_v4  ;;  %v1384_v4 = vld [vmem:[#allocation5 + $0x2a0] ss:$8 sps:$4 sm:$0xff]  }
  0x5c   :  { %945 = vmatpush2.bf16.msra.mxu1 %v1305_v5  ;;  %957 = vmatprep.subr.bf16.mxu0 %v1308_v6  ;;  %v1387_v5 = vld [vmem:[#allocation5 + $0x3a0] ss:$8 sps:$4 sm:$0xff]   ;;  %v1392_v6 = vld [vmem:[#allocation5 + $0x294] ss:$8 sps:$4 sm:$0xff]  }
  0x5d   :  { %1000 = vmatprep.subr.bf16.mxu1 %v1311_v7  ;;  %v1395_v7 = vld [vmem:[#allocation5 + $0x394] ss:$8 sps:$4 sm:$0xff]  }
  0x5e   :  { %904 = vmatmul.mubr.bf16.vlgmr.msra.gmra.mxu0 %v1065_v8  ;;  %v1390_v8 = vld [vmem:[#allocation5 + $0x290] ss:$8 sps:$4 sm:$0xff]  }
  0x5f   :  { %947 = vmatmul.mubr.bf16.vlgmr.msra.gmra.mxu1 %v1067_v9  ;;  %958 = vmatpush1.bf16.msra.mxu0 %v1306_v10  ;;  %v1393_v9 = vld [vmem:[#allocation5 + $0x390] ss:$8 sps:$4 sm:$0xff]   ;;  %v1398_v10 = vld [vmem:[#allocation5 + $0x284] ss:$8 sps:$4 sm:$0xff]  }
  0x60   :  { %1001 = vmatpush1.bf16.msra.mxu1 %v1309_v11  ;;  %959 = vmatprep.subr.bf16.mxu0 %v1314_v12  ;;  %v1401_v11 = vld [vmem:[#allocation5 + $0x384] ss:$8 sps:$4 sm:$0xff]   ;;  %v1396_v12 = vld [vmem:[#allocation5 + $0x280] ss:$8 sps:$4 sm:$0xff]  }
  0x61   :  { %1002 = vmatprep.subr.bf16.mxu1 %v1317_v13  ;;  %989 = vmatprep.mubr.bf16.mxu0 %v1070_v40  ;;  %v1399_v13 = vld [vmem:[#allocation5 + $0x380] ss:$8 sps:$4 sm:$0xff]  }
  0x62   :  { %1032 = vmatprep.mubr.bf16.mxu1 %v1072_v43 }
  0x63   :  { %960 = vmatpush1.bf16.msra.mxu0 %v1312_v14  ;;  %v1069_v14 = vcombine.low %v1503_v34, %v1505_v35 }
  0x64   :  { %1003 = vmatpush1.bf16.msra.mxu1 %v1315_v15  ;;  %961 = vmatprep.subr.bf16.mxu0 %v1320_v16  ;;  %v1071_v15 = vcombine.low %v1507_v36, %v1509_v37  ;;  %v181_v16 = vlaneseq }
  0x65   :  { %1004 = vmatprep.subr.bf16.mxu1 %v1323_v17 }
  0x66   :  { %v182_v17 = vshrl.u32 %v181_v16, 7 }
  0x67   :  { %962 = vmatpush1.bf16.msra.mxu0 %v1318_v18 }
  0x68   :  { %1005 = vmatpush1.bf16.msra.mxu1 %v1321_v19  ;;  %963 = vmatprep.subr.bf16.mxu0 %v1326_v20  ;;  %v183_v20 = vsub.s32 0, %v182_v17 }
  0x69   :  { %1006 = vmatprep.subr.bf16.mxu1 %v1329_v21  ;;  %v179_v21 = vld [vmem:[%s1527_s2] sm:$0x3]  ;;  %s1474_s2 = smov [#allocation7]  }
  0x6a   :  { %s1052_s26 = sshll.u32 %s1474_s2, 4  ;;  %s1053_s26 = int_to_ptr.vmem [resolvable:$true] %s1052_s26 }
  0x6b   :  { %964 = vmatpush1.bf16.msra.mxu0 %v1324_v22  ;;  %v187_v22 = vsub.s32 1, %v182_v17  ;;  %s1442_s27 = scalar_lea.vmem %s1053_s26, 512  ;;  %p1447_p11 = scmp.lt.s32.totalorder %s1053_s26, %s1053_s26 }
  0x6c   :  { %1007 = vmatpush1.bf16.msra.mxu1 %v1327_v23  ;;  %965 = vmatprep.subr.bf16.mxu0 %v1332_v24  ;;  %p1443_p10 = scmp.ne.s32.totalorder %s1053_s26, %s1442_s27  ;;  %p1448_p12 = scmp.lt.s32.totalorder %s1442_s27, %s1442_s27 }
  0x6d   :  { %1008 = vmatprep.subr.bf16.mxu1 %v1335_v25  ;;  %v184_v25 = vrot.slane %v179_v21, %v183_v20 }
  0x6e   :  { %p1449_p13 = por %p1448_p12, %p1447_p11 }
  0x6f   :  { %966 = vmatpush1.bf16.msra.mxu0 %v1330_v26  ;;  %v188_v26 = vrot.slane %v179_v21, %v187_v22 }
  0x70   :  { %1009 = vmatpush1.bf16.msra.mxu1 %v1333_v27  ;;  %967 = vmatprep.subr.bf16.mxu0 %v1338_v28  ;;  %p1450_p0 = pnand %p1449_p13, %p1443_p10 }
  0x71   :  { %1010 = vmatprep.subr.bf16.mxu1 %v1341_v29 }
  0x73   :  { %968 = vmatpush1.bf16.msra.mxu0 %v1336_v30 }
  0x74   :  { %1011 = vmatpush1.bf16.msra.mxu1 %v1339_v31  ;;  %969 = vmatprep.subr.bf16.mxu0 %v1344_v32 }
  0x75   :  { %1012 = vmatprep.subr.bf16.mxu1 %v1347_v33 }
  0x77   :  { %970 = vmatpush1.bf16.msra.mxu0 %v1342_v38 }
  0x78   :  { %1013 = vmatpush1.bf16.msra.mxu1 %v1345_v39  ;;  %971 = vmatprep.subr.bf16.mxu0 %v1350_v41 }
  0x79   :  { %1014 = vmatprep.subr.bf16.mxu1 %v1353_v42 }
  0x7b   :  { %972 = vmatpush1.bf16.msra.mxu0 %v1348_v44 }
  0x7c   :  { %1015 = vmatpush1.bf16.msra.mxu1 %v1351_v45  ;;  %973 = vmatprep.subr.bf16.mxu0 %v1356_v46 }
  0x7d   :  { %1016 = vmatprep.subr.bf16.mxu1 %v1359_v47 }
  0x7f   :  { %974 = vmatpush2.bf16.msra.mxu0 %v1354_v48 }
  0x80   :  { %1017 = vmatpush2.bf16.msra.mxu1 %v1357_v49  ;;  %975 = vmatprep.subr.bf16.mxu0 %v1362_v50 }
  0x81   :  { %1018 = vmatprep.subr.bf16.mxu1 %v1365_v51 }
  0x83   :  { %976 = vmatpush2.bf16.msra.mxu0 %v1360_v52 }
  0x84   :  { %1019 = vmatpush2.bf16.msra.mxu1 %v1363_v53  ;;  %977 = vmatprep.subr.bf16.mxu0 %v1368_v54 }
  0x85   :  { %1020 = vmatprep.subr.bf16.mxu1 %v1371_v55 }
  0x87   :  { %978 = vmatpush2.bf16.msra.mxu0 %v1366_v56 }
  0x88   :  { %1021 = vmatpush2.bf16.msra.mxu1 %v1369_v57  ;;  %979 = vmatprep.subr.bf16.mxu0 %v1374_v58 }
  0x89   :  { %1022 = vmatprep.subr.bf16.mxu1 %v1377_v59 }
  0x8b   :  { %980 = vmatpush2.bf16.msra.mxu0 %v1372_v60 }
  0x8c   :  { %1023 = vmatpush2.bf16.msra.mxu1 %v1375_v61  ;;  %981 = vmatprep.subr.bf16.mxu0 %v1380_v62 }
  0x8d   :  { %1024 = vmatprep.subr.bf16.mxu1 %v1383_v63 }
  0x8f   :  { %982 = vmatpush2.bf16.msra.mxu0 %v1378_v0 }
  0x90   :  { %1025 = vmatpush2.bf16.msra.mxu1 %v1381_v1  ;;  %983 = vmatprep.subr.bf16.mxu0 %v1386_v2 }
  0x91   :  { %1026 = vmatprep.subr.bf16.mxu1 %v1389_v3 }
  0x93   :  { %984 = vmatpush2.bf16.msra.mxu0 %v1384_v4 }
  0x94   :  { %1027 = vmatpush2.bf16.msra.mxu1 %v1387_v5  ;;  %985 = vmatprep.subr.bf16.mxu0 %v1392_v6 }
  0x95   :  { %1028 = vmatprep.subr.bf16.mxu1 %v1395_v7 }
  0x97   :  { %986 = vmatpush2.bf16.msra.mxu0 %v1390_v8 }
  0x98   :  { %1029 = vmatpush2.bf16.msra.mxu1 %v1393_v9  ;;  %987 = vmatprep.subr.bf16.mxu0 %v1398_v10 }
  0x99   :  { %1030 = vmatprep.subr.bf16.mxu1 %v1401_v11 }
  0x9b   :  { %988 = vmatpush2.bf16.msra.mxu0 %v1396_v12 }
  0x9c   :  { %1031 = vmatpush2.bf16.msra.mxu1 %v1399_v13 }
  0x9e   :  { %990 = vmatmul.mubr.bf16.vlgmr.msra.gmra.mxu0 %v1069_v14 }
  0x9f   :  { %1033 = vmatmul.mubr.bf16.vlgmr.msra.gmra.mxu1 %v1071_v15 }
 0x11e   :  { %v905_v18 = vpop.f32.mrf.mxu0 }
 0x11f   :  { %v948_v19 = vpop.f32.mrf.mxu1  ;;  %v906_v29 = vadd.f32 %v905_v18, %v184_v25 }
 0x120   :  { %v907_v23 = vpop.f32.mrf.mxu0 }
 0x121   :  { %v950_v24 = vpop.f32.mrf.mxu1  ;;  %v908_v30 = vadd.f32 %v907_v23, %v188_v26  ;;  %v949_v33 = vadd.f32 %v948_v19, %v906_v29 }
 0x122   :  { %v909_v27 = vpop.f32.mrf.mxu0 }
 0x123   :  { %v952_v28 = vpop.f32.mrf.mxu1  ;;  %v910_v34 = vadd.f32 %v909_v27, %v184_v25  ;;  %v951_v37 = vadd.f32 %v950_v24, %v908_v30 }
 0x124   :  { %v911_v31 = vpop.f32.mrf.mxu0 }
 0x125   :  { %v954_v32 = vpop.f32.mrf.mxu1  ;;  %v912_v38 = vadd.f32 %v911_v31, %v188_v26  ;;  %v953_v42 = vadd.f32 %v952_v28, %v910_v34 }
 0x127   :  { %v955_v47 = vadd.f32 %v954_v32, %v912_v38 }
 0x15e   :  { %v991_v35 = vpop.f32.mrf.mxu0 }
 0x15f   :  { %v1034_v36 = vpop.f32.mrf.mxu1  ;;  %v992_v39 = vadd.f32 %v991_v35, %v949_v33 }
 0x160   :  { %v993_v40 = vpop.f32.mrf.mxu0 }
 0x161   :  { %v1036_v41 = vpop.f32.mrf.mxu1  ;;  %v1035_v43 = vadd.f32 %v1034_v36, %v992_v39  ;;  %v994_v44 = vadd.f32 %v993_v40, %v951_v37 }
 0x162   :  { %v995_v45 = vpop.f32.mrf.mxu0 }
 0x163   :  { %v1038_v46 = vpop.f32.mrf.mxu1  ;;  %1043 = vst [vmem:[#allocation7] sm:$0xff] %v1035_v43  ;;  %v1037_v48 = vadd.f32 %v1036_v41, %v994_v44  ;;  %v996_v49 = vadd.f32 %v995_v45, %v953_v42 }
 0x164   :  { %v997_v50 = vpop.f32.mrf.mxu0 }
 0x165   :  { %1044 = vst [vmem:[#allocation7 + $0x8] sm:$0xff] %v1037_v48  ;;  %v1039_v51 = vadd.f32 %v1038_v46, %v996_v49  ;;  %v998_v52 = vadd.f32 %v997_v50, %v955_v47  ;;  %v1040_v53 = vpop.f32.mrf.mxu1 }
 0x167   :  { %1045 = vst [vmem:[#allocation7 + $0x10] sm:$0xff] %v1039_v51  ;;  %v1041_v54 = vadd.f32 %v1040_v53, %v998_v52 }
 0x169   :  { %1046 = vst [vmem:[#allocation7 + $0x18] sm:$0xff] %v1041_v54 }
 0x16a   :  { %1453 = shalt.err (!%p1450_p0)
}
 0x16b   :  { %s1475_s28 = smov 256   ;;  %s1476_s29 = smov 16  }
 0x16c   :  { %1058 = dma.vmem_to_hbm [thread:$0]  %s1053_s26, 512, %s1528_s3, [#allocation4], %s1475_s28, %s1475_s28, %s1476_s29  }
 0x16d   :  { %1466 = dma.done.wait [#allocation4], 512  }
 0x16e   :  { %1467 = vsyncadd [#allocation4], 4294966784 }
 0x16f   :  { %1062 = vsyncpa [#allocation3], 1 }
 0x170   :  { %1063 = vsyncpa [#allocation6], 1 }
 0x171   :  { %1064 = vsyncpa [#allocation4], 1 }

</bundles_post_ra>
